<compile_context>
chip_gen: v7x
topology: tpu7x:2x2x1
jax: 0.10.0
libtpu: 0.0.40
codegen_flags: <defaults>
</compile_context>

<pallas_src>
import functools

import jax
import jax.numpy as jnp
from jax.experimental import pallas as pl
from jax.experimental.pallas import tpu as pltpu


HIDDEN = 200          # logical hidden size (fixed by the module)
HIDDEN_PAD = 256      # padded hidden size used on-chip


def _round_up(x, m):
    return ((x + m - 1) // m) * m


def _encoder_kernel(x_ref,
                    w1_ref, b1_ref,
                    w2_ref, b2_ref,
                    w3_ref, b3_ref,
                    w4_ref, b4_ref,
                    o_ref):
    # x_ref: (tile_m, D_pad) bf16; weights: (in_pad, out_pad) bf16; biases: (1, out_pad) f32
    bf16 = jnp.bfloat16
    x = x_ref[...]  # already bf16, no extra convert on the load path

    # layer 1: relu(x @ W1 + b1)   (f32 accumulation)
    h = jnp.dot(x, w1_ref[...], preferred_element_type=jnp.float32) + b1_ref[...]
    h = jnp.maximum(h, 0.0)

    # layer 2: residual + relu
    h2 = jnp.dot(h.astype(bf16), w2_ref[...],
                 preferred_element_type=jnp.float32) + b2_ref[...]
    h = h + jnp.maximum(h2, 0.0)

    # layer 3: residual + relu
    h3 = jnp.dot(h.astype(bf16), w3_ref[...],
                 preferred_element_type=jnp.float32) + b3_ref[...]
    h = h + jnp.maximum(h3, 0.0)

    # layer 4: relu
    out = jnp.dot(h.astype(bf16), w4_ref[...],
                  preferred_element_type=jnp.float32) + b4_ref[...]
    o_ref[...] = jnp.maximum(out, 0.0).astype(o_ref.dtype)


def _prepare_params(params, D, D_pad, out_dim, out_pad):
    """Zero-pad (in,out)-layout f32 params to padded dims; cast weights to bf16."""
    w1, b1, w2, b2, w3, b3, w4, b4 = params

    def pad2(w, rows, cols):
        return jnp.pad(w, ((0, rows - w.shape[0]), (0, cols - w.shape[1])))

    w1p = pad2(w1, D_pad, HIDDEN_PAD).astype(jnp.bfloat16)
    w2p = pad2(w2, HIDDEN_PAD, HIDDEN_PAD).astype(jnp.bfloat16)
    w3p = pad2(w3, HIDDEN_PAD, HIDDEN_PAD).astype(jnp.bfloat16)
    w4p = pad2(w4, HIDDEN_PAD, out_pad).astype(jnp.bfloat16)
    b1p = pad2(b1, 1, HIDDEN_PAD).astype(jnp.float32)
    b2p = pad2(b2, 1, HIDDEN_PAD).astype(jnp.float32)
    b3p = pad2(b3, 1, HIDDEN_PAD).astype(jnp.float32)
    b4p = pad2(b4, 1, out_pad).astype(jnp.float32)
    return (w1p, b1p, w2p, b2p, w3p, b3p, w4p, b4p)


@functools.partial(jax.jit, static_argnames=("tile_m",))
def encoder_forward(input_batch, interval, params, *, tile_m=256):
    """input_batch: (B, T, H, W). `interval` is unused (matches the PyTorch
    forward, which ignores it)."""
    del interval
    B, T, H, W = input_batch.shape
    D = H * W
    M = B * T

    w4 = params[6]
    out_dim = w4.shape[1]

    # Padded geometry (lane-dense everywhere, bf16-friendly sublanes).
    D_pad = _round_up(D, 128)
    out_pad = _round_up(out_dim, 128)
    tile_m_eff = max(16, min(tile_m, _round_up(M, 16)))
    tile_m_eff = _round_up(tile_m_eff, 16)        # bf16 sublane packing
    M_pad = _round_up(M, tile_m_eff)

    # Pad & cast activations / params in the wrapper (not inside the kernel).
    x2d = input_batch.reshape(M, D).astype(jnp.bfloat16)
    x2d = jnp.pad(x2d, ((0, M_pad - M), (0, D_pad - D)))
    (w1p, b1p, w2p, b2p, w3p, b3p, w4p, b4p) = _prepare_params(
        params, D, D_pad, out_dim, out_pad)

    grid = (M_pad // tile_m_eff,)

    def full(shape):
        # Constant index_map -> block stays resident across grid steps.
        return pl.BlockSpec(shape, lambda i: (0, 0))

    flops = 2 * M_pad * (D_pad * HIDDEN_PAD
                         + 2 * HIDDEN_PAD * HIDDEN_PAD
                         + HIDDEN_PAD * out_pad)
    bytes_accessed = (
        M_pad * D_pad * 2                                   # x (bf16)
        + (D_pad * HIDDEN_PAD + 2 * HIDDEN_PAD * HIDDEN_PAD
           + HIDDEN_PAD * out_pad) * 2                      # weights (bf16)
        + (3 * HIDDEN_PAD + out_pad) * 4                    # biases (f32)
        + M_pad * out_pad * 4)                              # output (f32)

    out2d = pl.pallas_call(
        _encoder_kernel,
        out_shape=jax.ShapeDtypeStruct((M_pad, out_pad), jnp.float32),
        grid_spec=pltpu.PrefetchScalarGridSpec(
            num_scalar_prefetch=0,
            grid=grid,
            in_specs=[
                pl.BlockSpec((tile_m_eff, D_pad), lambda i: (i, 0)),  # x tile
                full((D_pad, HIDDEN_PAD)), full((1, HIDDEN_PAD)),     # L1
                full((HIDDEN_PAD, HIDDEN_PAD)), full((1, HIDDEN_PAD)),  # L2
                full((HIDDEN_PAD, HIDDEN_PAD)), full((1, HIDDEN_PAD)),  # L3
                full((HIDDEN_PAD, out_pad)), full((1, out_pad)),      # L4
            ],
            out_specs=pl.BlockSpec((tile_m_eff, out_pad), lambda i: (i, 0)),
        ),
        compiler_params=pltpu.CompilerParams(
            dimension_semantics=("parallel",),
            vmem_limit_bytes=64 * 1024 * 1024),
        cost_estimate=pl.CostEstimate(
            flops=flops, transcendentals=0, bytes_accessed=bytes_accessed),
    )(x2d, w1p, b1p, w2p, b2p, w3p, b3p, w4p, b4p)

    # Strip padding, restore (B, T, out_dim).
    return out2d[:M, :out_dim].reshape(B, T, out_dim)


def init_encoder_params(key, input_dim, ssm_input_dim):
    """Deterministic synthetic params. Weights stored (in, out), f32."""
    D = input_dim[0] * input_dim[1]
    ks = jax.random.split(key, 8)
    scale = 0.05
    w1 = scale * jax.random.normal(ks[0], (D, HIDDEN), jnp.float32)
    b1 = scale * jax.random.normal(ks[1], (1, HIDDEN), jnp.float32)
    w2 = scale * jax.random.normal(ks[2], (HIDDEN, HIDDEN), jnp.float32)
    b2 = scale * jax.random.normal(ks[3], (1, HIDDEN), jnp.float32)
    w3 = scale * jax.random.normal(ks[4], (HIDDEN, HIDDEN), jnp.float32)
    b3 = scale * jax.random.normal(ks[5], (1, HIDDEN), jnp.float32)
    w4 = scale * jax.random.normal(ks[6], (HIDDEN, ssm_input_dim), jnp.float32)
    b4 = scale * jax.random.normal(ks[7], (1, ssm_input_dim), jnp.float32)
    return (w1, b1, w2, b2, w3, b3, w4, b4)


def encoder_reference_f32(input_batch, params):
    """Pure-JAX f32 reference mirroring the PyTorch forward."""
    B, T, H, W = input_batch.shape
    x = input_batch.reshape(B * T, H * W).astype(jnp.float32)
    w1, b1, w2, b2, w3, b3, w4, b4 = params
    h = jax.nn.relu(x @ w1 + b1)
    h = h + jax.nn.relu(h @ w2 + b2)
    h = h + jax.nn.relu(h @ w3 + b3)
    out = jax.nn.relu(h @ w4 + b4)
    return out.reshape(B, T, -1)


def encoder_reference_bf16(input_batch, params):
    """Pure-JAX reference with the same bf16-operand / f32-accumulate math."""
    bf = jnp.bfloat16
    B, T, H, W = input_batch.shape
    x = input_batch.reshape(B * T, H * W).astype(bf)
    w1, b1, w2, b2, w3, b3, w4, b4 = params

    def mm(a, w):
        return jnp.dot(a.astype(bf), w.astype(bf),
                       preferred_element_type=jnp.float32)

    h = jax.nn.relu(mm(x, w1) + b1)
    h = h + jax.nn.relu(mm(h, w2) + b2)
    h = h + jax.nn.relu(mm(h, w3) + b3)
    out = jax.nn.relu(mm(h, w4) + b4)
    return out.reshape(B, T, -1)


if __name__ == "__main__":
    key = jax.random.PRNGKey(0)
    k_x, k_p = jax.random.split(key)

    # Small shapes consistent with the module.
    B, T = 2, 8
    input_dim = (16, 16)          # H, W  -> flattened 256
    ssm_input_dim = 32
    # ode_dim / ssm_dropout exist in __init__ but are unused by forward.

    x = jax.random.normal(k_x, (B, T, input_dim[0], input_dim[1]), jnp.float32)
    interval = jnp.ones((B, T), jnp.float32)  # ignored by forward

    params = init_encoder_params(k_p, input_dim, ssm_input_dim)

    out = encoder_forward(x, interval, params)
    out = jax.block_until_ready(out)
    assert out.shape == (B, T, ssm_input_dim)

    # Exact-semantics check vs a matched-precision (bf16 operands, f32 acc) ref.
    ref_bf16 = encoder_reference_bf16(x, params)
    assert jnp.allclose(out, ref_bf16, atol=2e-3, rtol=2e-3), (
        float(jnp.max(jnp.abs(out - ref_bf16))))

    # Sanity check vs the full-f32 PyTorch-equivalent reference (bf16 rounding
    # of MXU operands gives a small, bounded deviation).
    ref_f32 = encoder_reference_f32(x, params)
    assert jnp.allclose(out, ref_f32, atol=5e-2, rtol=5e-2), (
        float(jnp.max(jnp.abs(out - ref_f32))))

    print("KERNEL_OK")
</pallas_src>

<mosaic_0001>
module attributes {stable_mosaic.version = 11 : i64} {
  func.func @_encoder_kernel(%arg0: i32, %arg1: memref<16x256xbf16, #tpu.memory_space<vmem>>, %arg2: memref<256x256xbf16, #tpu.memory_space<vmem>>, %arg3: memref<1x256xf32, #tpu.memory_space<vmem>>, %arg4: memref<256x256xbf16, #tpu.memory_space<vmem>>, %arg5: memref<1x256xf32, #tpu.memory_space<vmem>>, %arg6: memref<256x256xbf16, #tpu.memory_space<vmem>>, %arg7: memref<1x256xf32, #tpu.memory_space<vmem>>, %arg8: memref<256x128xbf16, #tpu.memory_space<vmem>>, %arg9: memref<1x128xf32, #tpu.memory_space<vmem>>, %arg10: memref<16x128xf32, #tpu.memory_space<vmem>>) attributes {dimension_semantics = [#tpu.dimension_semantics<parallel>], iteration_bounds = array<i64: 1>, scalar_prefetch = 0 : i64, scratch_operands = 0 : i64, tpu.core_type = #tpu.core_type<tc>, window_params = [{transform_indices = @transform_0, window_bounds = array<i64: 16, 256>}, {pipeline_mode = #tpu.pipeline_mode<synchronous>, transform_indices = @transform_1, window_bounds = array<i64: 256, 256>}, {pipeline_mode = #tpu.pipeline_mode<synchronous>, transform_indices = @transform_2, window_bounds = array<i64: 1, 256>}, {pipeline_mode = #tpu.pipeline_mode<synchronous>, transform_indices = @transform_3, window_bounds = array<i64: 256, 256>}, {pipeline_mode = #tpu.pipeline_mode<synchronous>, transform_indices = @transform_4, window_bounds = array<i64: 1, 256>}, {pipeline_mode = #tpu.pipeline_mode<synchronous>, transform_indices = @transform_5, window_bounds = array<i64: 256, 256>}, {pipeline_mode = #tpu.pipeline_mode<synchronous>, transform_indices = @transform_6, window_bounds = array<i64: 1, 256>}, {pipeline_mode = #tpu.pipeline_mode<synchronous>, transform_indices = @transform_7, window_bounds = array<i64: 256, 128>}, {pipeline_mode = #tpu.pipeline_mode<synchronous>, transform_indices = @transform_8, window_bounds = array<i64: 1, 128>}, {transform_indices = @transform_9, window_bounds = array<i64: 16, 128>}]} {
    %c0 = arith.constant 0 : index
    %c0_0 = arith.constant 0 : index
    %0 = vector.load %arg1[%c0, %c0_0] : memref<16x256xbf16, #tpu.memory_space<vmem>>, vector<16x256xbf16>
    %c0_1 = arith.constant 0 : index
    %c0_2 = arith.constant 0 : index
    %1 = vector.load %arg2[%c0_1, %c0_2] : memref<256x256xbf16, #tpu.memory_space<vmem>>, vector<256x256xbf16>
    %cst = arith.constant dense<0.000000e+00> : vector<16x256xf32>
    %2 = tpu.matmul %0, %1, %cst {dimension_numbers = #tpu.dot_dimension_numbers<[1], [0], [0], [1], [0, 0, 1, 1], [], []>} : vector<16x256xbf16>, vector<256x256xbf16>, vector<16x256xf32> -> vector<16x256xf32>
    %c0_3 = arith.constant 0 : index
    %c0_4 = arith.constant 0 : index
    %3 = vector.load %arg3[%c0_3, %c0_4] : memref<1x256xf32, #tpu.memory_space<vmem>>, vector<1x256xf32>
    %4 = vector.broadcast %3 : vector<1x256xf32> to vector<16x256xf32>
    %5 = arith.addf %2, %4 : vector<16x256xf32>
    %cst_5 = arith.constant 0.000000e+00 : f32
    %6 = vector.broadcast %cst_5 : f32 to vector<16x256xf32>
    %7 = arith.maximumf %5, %6 : vector<16x256xf32>
    %8 = arith.truncf %7 : vector<16x256xf32> to vector<16x256xbf16>
    %c0_6 = arith.constant 0 : index
    %c0_7 = arith.constant 0 : index
    %9 = vector.load %arg4[%c0_6, %c0_7] : memref<256x256xbf16, #tpu.memory_space<vmem>>, vector<256x256xbf16>
    %cst_8 = arith.constant dense<0.000000e+00> : vector<16x256xf32>
    %10 = tpu.matmul %8, %9, %cst_8 {dimension_numbers = #tpu.dot_dimension_numbers<[1], [0], [0], [1], [0, 0, 1, 1], [], []>} : vector<16x256xbf16>, vector<256x256xbf16>, vector<16x256xf32> -> vector<16x256xf32>
    %c0_9 = arith.constant 0 : index
    %c0_10 = arith.constant 0 : index
    %11 = vector.load %arg5[%c0_9, %c0_10] : memref<1x256xf32, #tpu.memory_space<vmem>>, vector<1x256xf32>
    %12 = vector.broadcast %11 : vector<1x256xf32> to vector<16x256xf32>
    %13 = arith.addf %10, %12 : vector<16x256xf32>
    %cst_11 = arith.constant 0.000000e+00 : f32
    %14 = vector.broadcast %cst_11 : f32 to vector<16x256xf32>
    %15 = arith.maximumf %13, %14 : vector<16x256xf32>
    %16 = arith.addf %7, %15 : vector<16x256xf32>
    %17 = arith.truncf %16 : vector<16x256xf32> to vector<16x256xbf16>
    %c0_12 = arith.constant 0 : index
    %c0_13 = arith.constant 0 : index
    %18 = vector.load %arg6[%c0_12, %c0_13] : memref<256x256xbf16, #tpu.memory_space<vmem>>, vector<256x256xbf16>
    %cst_14 = arith.constant dense<0.000000e+00> : vector<16x256xf32>
    %19 = tpu.matmul %17, %18, %cst_14 {dimension_numbers = #tpu.dot_dimension_numbers<[1], [0], [0], [1], [0, 0, 1, 1], [], []>} : vector<16x256xbf16>, vector<256x256xbf16>, vector<16x256xf32> -> vector<16x256xf32>
    %c0_15 = arith.constant 0 : index
    %c0_16 = arith.constant 0 : index
    %20 = vector.load %arg7[%c0_15, %c0_16] : memref<1x256xf32, #tpu.memory_space<vmem>>, vector<1x256xf32>
    %21 = vector.broadcast %20 : vector<1x256xf32> to vector<16x256xf32>
    %22 = arith.addf %19, %21 : vector<16x256xf32>
    %cst_17 = arith.constant 0.000000e+00 : f32
    %23 = vector.broadcast %cst_17 : f32 to vector<16x256xf32>
    %24 = arith.maximumf %22, %23 : vector<16x256xf32>
    %25 = arith.addf %16, %24 : vector<16x256xf32>
    %26 = arith.truncf %25 : vector<16x256xf32> to vector<16x256xbf16>
    %c0_18 = arith.constant 0 : index
    %c0_19 = arith.constant 0 : index
    %27 = vector.load %arg8[%c0_18, %c0_19] : memref<256x128xbf16, #tpu.memory_space<vmem>>, vector<256x128xbf16>
    %cst_20 = arith.constant dense<0.000000e+00> : vector<16x128xf32>
    %28 = tpu.matmul %26, %27, %cst_20 {dimension_numbers = #tpu.dot_dimension_numbers<[1], [0], [0], [1], [0, 0, 1, 1], [], []>} : vector<16x256xbf16>, vector<256x128xbf16>, vector<16x128xf32> -> vector<16x128xf32>
    %c0_21 = arith.constant 0 : index
    %c0_22 = arith.constant 0 : index
    %29 = vector.load %arg9[%c0_21, %c0_22] : memref<1x128xf32, #tpu.memory_space<vmem>>, vector<1x128xf32>
    %30 = vector.broadcast %29 : vector<1x128xf32> to vector<16x128xf32>
    %31 = arith.addf %28, %30 : vector<16x128xf32>
    %cst_23 = arith.constant 0.000000e+00 : f32
    %32 = vector.broadcast %cst_23 : f32 to vector<16x128xf32>
    %33 = arith.maximumf %31, %32 : vector<16x128xf32>
    %c0_24 = arith.constant 0 : index
    %c0_25 = arith.constant 0 : index
    %34 = vector.load %arg10[%c0_24, %c0_25] : memref<16x128xf32, #tpu.memory_space<vmem>>, vector<16x128xf32>
    tpu.vector_store %arg10[%c0_24, %c0_25], %33 {strides = array<i32>} : memref<16x128xf32, #tpu.memory_space<vmem>>, vector<16x128xf32>,
    return
  }
  func.func @transform_0(%arg0: i32) -> (i32, i32) {
    %c0_i32 = arith.constant 0 : i32
    %c0_i32_0 = arith.constant 0 : i32
    return %arg0, %c0_i32 : i32, i32
  }
  func.func @transform_1(%arg0: i32) -> (i32, i32) {
    %c0_i32 = arith.constant 0 : i32
    %c0_i32_0 = arith.constant 0 : i32
    %c0_i32_1 = arith.constant 0 : i32
    return %c0_i32, %c0_i32_0 : i32, i32
  }
  func.func @transform_2(%arg0: i32) -> (i32, i32) {
    %c0_i32 = arith.constant 0 : i32
    %c0_i32_0 = arith.constant 0 : i32
    %c0_i32_1 = arith.constant 0 : i32
    return %c0_i32, %c0_i32_0 : i32, i32
  }
  func.func @transform_3(%arg0: i32) -> (i32, i32) {
    %c0_i32 = arith.constant 0 : i32
    %c0_i32_0 = arith.constant 0 : i32
    %c0_i32_1 = arith.constant 0 : i32
    return %c0_i32, %c0_i32_0 : i32, i32
  }
  func.func @transform_4(%arg0: i32) -> (i32, i32) {
    %c0_i32 = arith.constant 0 : i32
    %c0_i32_0 = arith.constant 0 : i32
    %c0_i32_1 = arith.constant 0 : i32
    return %c0_i32, %c0_i32_0 : i32, i32
  }
  func.func @transform_5(%arg0: i32) -> (i32, i32) {
    %c0_i32 = arith.constant 0 : i32
    %c0_i32_0 = arith.constant 0 : i32
    %c0_i32_1 = arith.constant 0 : i32
    return %c0_i32, %c0_i32_0 : i32, i32
  }
  func.func @transform_6(%arg0: i32) -> (i32, i32) {
    %c0_i32 = arith.constant 0 : i32
    %c0_i32_0 = arith.constant 0 : i32
    %c0_i32_1 = arith.constant 0 : i32
    return %c0_i32, %c0_i32_0 : i32, i32
  }
  func.func @transform_7(%arg0: i32) -> (i32, i32) {
    %c0_i32 = arith.constant 0 : i32
    %c0_i32_0 = arith.constant 0 : i32
    %c0_i32_1 = arith.constant 0 : i32
    return %c0_i32, %c0_i32_0 : i32, i32
  }
  func.func @transform_8(%arg0: i32) -> (i32, i32) {
    %c0_i32 = arith.constant 0 : i32
    %c0_i32_0 = arith.constant 0 : i32
    %c0_i32_1 = arith.constant 0 : i32
    return %c0_i32, %c0_i32_0 : i32, i32
  }
  func.func @transform_9(%arg0: i32) -> (i32, i32) {
    %c0_i32 = arith.constant 0 : i32
    %c0_i32_0 = arith.constant 0 : i32
    return %arg0, %c0_i32 : i32, i32
  }
}

</mosaic_0001>

<bundles_post_ra>
// kernel: encoder_forward.1
= control target key start
LH: loop header
LB: loop body
LE: loop exit
PB: predicated region body
PF: predicated region fallthrough
CT: control target
= control target key end

     0   :  { %14 = vsyncpa [#allocation3], 0  ;;  %s1903_s0 = inlined_call_operand.hbm [shape: bf16[16,256], index: 0, kind: input, shape index: {}]   ;;  %s1904_s1 = inlined_call_operand.hbm [shape: bf16[256,256], index: 1, kind: input, shape index: {}]   ;;  %s1905_s2 = inlined_call_operand.hbm [shape: f32[1,256], index: 2, kind: input, shape index: {}]   ;;  %s1906_s3 = inlined_call_operand.hbm [shape: bf16[256,256], index: 3, kind: input, shape index: {}]   ;;  %s1907_s4 = inlined_call_operand.hbm [shape: f32[1,256], index: 4, kind: input, shape index: {}]   ;;  %s1908_s5 = inlined_call_operand.hbm [shape: bf16[256,256], index: 5, kind: input, shape index: {}]   ;;  %s1909_s6 = inlined_call_operand.hbm [shape: f32[1,256], index: 6, kind: input, shape index: {}]   ;;  %s1910_s7 = inlined_call_operand.hbm [shape: bf16[256,128], index: 7, kind: input, shape index: {}]   ;;  %s1911_s8 = inlined_call_operand.hbm [shape: f32[1,128], index: 8, kind: input, shape index: {}]   ;;  %s1912_s9 = inlined_call_operand.hbm [shape: f32[16,128], index: 9, kind: output, shape index: {}]  }
   0x1   :  { %15 = vsyncpa [#allocation6], 0 }
   0x2   :  { %16 = vsyncpa [#allocation9], 0 }
   0x3   :  { %17 = vsyncpa [#allocation12], 0 }
   0x4   :  { %18 = vsyncpa [#allocation15], 0 }
   0x5   :  { %19 = vsyncpa [#allocation4], 0  ;;  %s1674_s30 = smov [#allocation5]   ;;  %s1675_s11 = smov [#allocation8]  }
   0x6   :  { %s37_s10 = sshll.u32 %s1674_s30, 4  ;;  %s59_s12 = sshll.u32 %s1675_s11, 4  ;;  %s38_s10 = int_to_ptr.vmem [resolvable:$true] %s37_s10  ;;  %s1738_s12 = int_to_ptr.vmem [resolvable:$true] %s59_s12 }
   0x7   :  { %s1442_s15 = scalar_lea.hbm %s1904_s1, 4096 }
   0x8   :  { %p1443_p0 = scmp.ne.s32.totalorder %s1904_s1, %s1442_s15  ;;  %p1446_p1 = scmp.lt.u32.totalorder %s1442_s15, %s1904_s1 }
   0xa   :  { %p1448_p2 = pnand %p1446_p1, %p1443_p0 }
   0xc   :  { %1451 = shalt.err (!%p1448_p2)
}
   0xd   :  { %s1452_s20 = scalar_lea.vmem %s38_s10, 4096  ;;  %p1457_p4 = scmp.lt.s32.totalorder %s38_s10, %s38_s10 }
   0xe   :  { %p1453_p3 = scmp.ne.s32.totalorder %s38_s10, %s1452_s20  ;;  %p1458_p5 = scmp.lt.s32.totalorder %s1452_s20, %s1452_s20 }
  0x10   :  { %p1459_p6 = por %p1458_p5, %p1457_p4 }
  0x12   :  { %p1460_p7 = pnand %p1459_p6, %p1453_p3 }
  0x14   :  { %1463 = shalt.err (!%p1460_p7)
}
  0x15   :  { %s1676_s21 = smov 128   ;;  %s1677_s22 = smov 8  }
  0x16   :  { %43 = dma.hbm_to_vmem [thread:$0]  %s1904_s1, 4096, %s38_s10, [#allocation6], %s1676_s21, %s1676_s21, %s1677_s22  }
  0x17   :  { %s1464_s27 = scalar_lea.hbm %s1906_s3, 4096 }
  0x18   :  { %p1465_p8 = scmp.ne.s32.totalorder %s1906_s3, %s1464_s27  ;;  %p1468_p9 = scmp.lt.u32.totalorder %s1464_s27, %s1906_s3 }
  0x1a   :  { %p1470_p10 = pnand %p1468_p9, %p1465_p8 }
  0x1c   :  { %1473 = shalt.err (!%p1470_p10)
}
  0x1d   :  { %s1474_s13 = scalar_lea.vmem %s1738_s12, 4096  ;;  %p1479_p12 = scmp.lt.s32.totalorder %s1738_s12, %s1738_s12 }
  0x1e   :  { %p1475_p11 = scmp.ne.s32.totalorder %s1738_s12, %s1474_s13  ;;  %p1480_p13 = scmp.lt.s32.totalorder %s1474_s13, %s1474_s13 }
  0x20   :  { %p1481_p0 = por %p1480_p13, %p1479_p12 }
  0x22   :  { %p1482_p1 = pnand %p1481_p0, %p1475_p11 }
  0x24   :  { %1485 = shalt.err (!%p1482_p1)
}
  0x25   :  { %65 = dma.hbm_to_vmem [thread:$0]  %s1906_s3, 4096, %s1738_s12, [#allocation9], %s1676_s21, %s1676_s21, %s1677_s22  }
  0x26   :  { %s1678_s14 = smov [#allocation11]   ;;  %s1679_s16 = smov [#allocation14]  }
  0x27   :  { %s81_s15 = sshll.u32 %s1678_s14, 4  ;;  %s103_s17 = sshll.u32 %s1679_s16, 4  ;;  %s82_s15 = int_to_ptr.vmem [resolvable:$true] %s81_s15  ;;  %s1775_s17 = int_to_ptr.vmem [resolvable:$true] %s103_s17 }
  0x28   :  { %s1486_s20 = scalar_lea.hbm %s1908_s5, 4096 }
  0x29   :  { %p1487_p2 = scmp.ne.s32.totalorder %s1908_s5, %s1486_s20  ;;  %p1490_p3 = scmp.lt.u32.totalorder %s1486_s20, %s1908_s5 }
  0x2b   :  { %p1492_p4 = pnand %p1490_p3, %p1487_p2 }
  0x2d   :  { %1495 = shalt.err (!%p1492_p4)
}
  0x2e   :  { %s1496_s3 = scalar_lea.vmem %s82_s15, 4096  ;;  %p1501_p6 = scmp.lt.s32.totalorder %s82_s15, %s82_s15 }
  0x2f   :  { %p1497_p5 = scmp.ne.s32.totalorder %s82_s15, %s1496_s3  ;;  %p1502_p7 = scmp.lt.s32.totalorder %s1496_s3, %s1496_s3 }
  0x31   :  { %p1503_p8 = por %p1502_p7, %p1501_p6 }
  0x33   :  { %p1504_p9 = pnand %p1503_p8, %p1497_p5 }
  0x35   :  { %1507 = shalt.err (!%p1504_p9)
}
  0x36   :  { %87 = dma.hbm_to_vmem [thread:$0]  %s1908_s5, 4096, %s82_s15, [#allocation12], %s1676_s21, %s1676_s21, %s1677_s22  }
  0x37   :  { %s1508_s30 = scalar_lea.hbm %s1910_s7, 2048 }
  0x38   :  { %p1509_p10 = scmp.ne.s32.totalorder %s1910_s7, %s1508_s30  ;;  %p1512_p11 = scmp.lt.u32.totalorder %s1508_s30, %s1910_s7 }
  0x3a   :  { %p1514_p12 = pnand %p1512_p11, %p1509_p10 }
  0x3c   :  { %1517 = shalt.err (!%p1514_p12)
}
  0x3d   :  { %s1518_s14 = scalar_lea.vmem %s1775_s17, 2048  ;;  %p1523_p0 = scmp.lt.s32.totalorder %s1775_s17, %s1775_s17 }
  0x3e   :  { %p1519_p13 = scmp.ne.s32.totalorder %s1775_s17, %s1518_s14  ;;  %p1524_p1 = scmp.lt.s32.totalorder %s1518_s14, %s1518_s14 }
  0x40   :  { %p1525_p2 = por %p1524_p1, %p1523_p0 }
  0x42   :  { %p1526_p3 = pnand %p1525_p2, %p1519_p13 }
  0x44   :  { %1529 = shalt.err (!%p1526_p3)
}
  0x45   :  { %s1680_s5 = smov 64   ;;  %s1681_s15 = smov 4  }
  0x46   :  { %109 = dma.hbm_to_vmem [thread:$0]  %s1910_s7, 2048, %s1775_s17, [#allocation15], %s1680_s5, %s1680_s5, %s1681_s15  }
  0x47   :  { %s1682_s19 = smov [#allocation2]   ;;  %s1683_s23 = smov [#allocation7]  }
  0x48   :  { %s25_s20 = sshll.u32 %s1682_s19, 4  ;;  %s50_s24 = sshll.u32 %s1683_s23, 4  ;;  %s26_s20 = int_to_ptr.vmem [resolvable:$true] %s25_s20  ;;  %s51_s24 = int_to_ptr.vmem [resolvable:$true] %s50_s24 }
  0x49   :  { %s1530_s3 = scalar_lea.hbm %s1903_s0, 256 }
  0x4a   :  { %p1531_p4 = scmp.ne.s32.totalorder %s1903_s0, %s1530_s3  ;;  %p1534_p5 = scmp.lt.u32.totalorder %s1530_s3, %s1903_s0 }
  0x4c   :  { %p1536_p6 = pnand %p1534_p5, %p1531_p4 }
  0x4e   :  { %1539 = shalt.err (!%p1536_p6)
}
  0x4f   :  { %s1540_s7 = scalar_lea.vmem %s26_s20, 256  ;;  %p1545_p8 = scmp.lt.s32.totalorder %s26_s20, %s26_s20 }
  0x50   :  { %p1541_p7 = scmp.ne.s32.totalorder %s26_s20, %s1540_s7  ;;  %p1546_p9 = scmp.lt.s32.totalorder %s1540_s7, %s1540_s7 }
  0x52   :  { %p1547_p10 = por %p1546_p9, %p1545_p8 }
  0x54   :  { %p1548_p11 = pnand %p1547_p10, %p1541_p7 }
  0x56   :  { %1551 = shalt.err (!%p1548_p11)
}
  0x57   :  { %31 = dma.hbm_to_vmem [thread:$0]  %s1903_s0, 256, %s26_s20, [#allocation3], %s1676_s21, %s1676_s21, %s1677_s22  }
  0x58   :  { %s1552_s1 = scalar_lea.hbm %s1905_s2, 32 }
  0x59   :  { %p1553_p12 = scmp.ne.s32.totalorder %s1905_s2, %s1552_s1  ;;  %p1556_p13 = scmp.lt.u32.totalorder %s1552_s1, %s1905_s2 }
  0x5b   :  { %p1558_p0 = pnand %p1556_p13, %p1553_p12 }
  0x5d   :  { %1561 = shalt.err (!%p1558_p0)
}
  0x5e   :  { %s1562_s16 = scalar_lea.vmem %s51_s24, 32  ;;  %p1567_p2 = scmp.lt.s32.totalorder %s51_s24, %s51_s24 }
  0x5f   :  { %p1563_p1 = scmp.ne.s32.totalorder %s51_s24, %s1562_s16  ;;  %p1568_p3 = scmp.lt.s32.totalorder %s1562_s16, %s1562_s16 }
  0x61   :  { %p1569_p4 = por %p1568_p3, %p1567_p2 }
  0x63   :  { %p1570_p5 = pnand %p1569_p4, %p1563_p1 }
  0x65   :  { %1573 = shalt.err (!%p1570_p5)
}
  0x66   :  { %53 = dma.hbm_to_vmem [thread:$0]  %s1905_s2, 32, %s51_s24, [#allocation6]  }
  0x67   :  { %s1684_s19 = smov [#allocation10]   ;;  %s1685_s23 = smov [#allocation13]  }
  0x68   :  { %s72_s20 = sshll.u32 %s1684_s19, 4  ;;  %s94_s25 = sshll.u32 %s1685_s23, 4  ;;  %s73_s20 = int_to_ptr.vmem [resolvable:$true] %s72_s20  ;;  %s95_s25 = int_to_ptr.vmem [resolvable:$true] %s94_s25 }
  0x69   :  { %s1574_s12 = scalar_lea.hbm %s1907_s4, 32 }
  0x6a   :  { %p1575_p6 = scmp.ne.s32.totalorder %s1907_s4, %s1574_s12  ;;  %p1578_p7 = scmp.lt.u32.totalorder %s1574_s12, %s1907_s4 }
  0x6c   :  { %p1580_p8 = pnand %p1578_p7, %p1575_p6 }
  0x6e   :  { %1583 = shalt.err (!%p1580_p8)
}
  0x6f   :  { %s1584_s2 = scalar_lea.vmem %s73_s20, 32  ;;  %p1589_p10 = scmp.lt.s32.totalorder %s73_s20, %s73_s20 }
  0x70   :  { %p1585_p9 = scmp.ne.s32.totalorder %s73_s20, %s1584_s2  ;;  %p1590_p11 = scmp.lt.s32.totalorder %s1584_s2, %s1584_s2 }
  0x72   :  { %p1591_p12 = por %p1590_p11, %p1589_p10 }
  0x74   :  { %p1592_p13 = pnand %p1591_p12, %p1585_p9 }
  0x76   :  { %1595 = shalt.err (!%p1592_p13)
}
  0x77   :  { %75 = dma.hbm_to_vmem [thread:$0]  %s1907_s4, 32, %s73_s20, [#allocation9]  }
  0x78   :  { %s1596_s13 = scalar_lea.hbm %s1909_s6, 32 }
  0x79   :  { %p1597_p0 = scmp.ne.s32.totalorder %s1909_s6, %s1596_s13  ;;  %p1600_p1 = scmp.lt.u32.totalorder %s1596_s13, %s1909_s6 }
  0x7b   :  { %p1602_p2 = pnand %p1600_p1, %p1597_p0 }
  0x7d   :  { %1605 = shalt.err (!%p1602_p2)
}
  0x7e   :  { %s1606_s15 = scalar_lea.vmem %s95_s25, 32  ;;  %p1611_p4 = scmp.lt.s32.totalorder %s95_s25, %s95_s25 }
  0x7f   :  { %p1607_p3 = scmp.ne.s32.totalorder %s95_s25, %s1606_s15  ;;  %p1612_p5 = scmp.lt.s32.totalorder %s1606_s15, %s1606_s15 }
  0x81   :  { %p1613_p6 = por %p1612_p5, %p1611_p4 }
  0x83   :  { %p1614_p7 = pnand %p1613_p6, %p1607_p3 }
  0x85   :  { %1617 = shalt.err (!%p1614_p7)
}
  0x86   :  { %97 = dma.hbm_to_vmem [thread:$0]  %s1909_s6, 32, %s95_s25, [#allocation12]  }
  0x87   :  { %s1686_s0 = smov [#allocation16]   ;;  %s1618_s23 = scalar_lea.hbm %s1911_s8, 16 }
  0x88   :  { %s116_s18 = sshll.u32 %s1686_s0, 4  ;;  %p1619_p8 = scmp.ne.s32.totalorder %s1911_s8, %s1618_s23  ;;  %s117_s18 = int_to_ptr.vmem [resolvable:$true] %s116_s18 }
  0x89   :  { %p1622_p9 = scmp.lt.u32.totalorder %s1618_s23, %s1911_s8 }
  0x8b   :  { %p1624_p10 = pnand %p1622_p9, %p1619_p8 }
  0x8d   :  { %1627 = shalt.err (!%p1624_p10)
}
  0x8e   :  { %s1628_s28 = scalar_lea.vmem %s117_s18, 16  ;;  %s1632_s6 = scalar_lea.vmem %s117_s18, 32 }
  0x8f   :  { %p1629_p11 = scmp.ne.s32.totalorder %s117_s18, %s1628_s28  ;;  %p1633_p12 = scmp.lt.s32.totalorder %s117_s18, %s117_s18 }
  0x90   :  { %p1634_p13 = scmp.lt.s32.totalorder %s1632_s6, %s1628_s28 }
  0x92   :  { %p1635_p0 = por %p1634_p13, %p1633_p12 }
  0x94   :  { %p1636_p1 = pnand %p1635_p0, %p1629_p11 }
  0x96   :  { %1639 = shalt.err (!%p1636_p1)
}
  0x97   :  { %119 = dma.hbm_to_vmem [thread:$0]  %s1911_s8, 16, %s117_s18, [#allocation15]  }
  0x98   :  { %1662 = dma.done.wait [#allocation3], 256  }
  0x99   :  { %1663 = vsyncadd [#allocation3], 4294967040 }
  0x9a   :  { %1664 = dma.done.wait [#allocation6], 4128  }
  0x9b   :  { %1665 = vsyncadd [#allocation6], 4294963168 }
  0x9c   :  { %1666 = dma.done.wait [#allocation9], 4128  }
  0x9d   :  { %1667 = vsyncadd [#allocation9], 4294963168 }
  0x9e   :  { %1668 = dma.done.wait [#allocation12], 4128  }
  0x9f   :  { %1669 = vsyncadd [#allocation12], 4294963168 }
  0xa0   :  { %1670 = dma.done.wait [#allocation15], 2064  }
  0xa1   :  { %1671 = vsyncadd [#allocation15], 4294965232  ;;  %v1279_v0 = vld [vmem:[#allocation5 + $0x4] ss:$8 sps:$4 sm:$0xff]   ;;  %v1281_v1 = vld [vmem:[#allocation5] ss:$8 sps:$4 sm:$0xff]  }
  0xa2   :  { %364 = vmatprep.subr.bf16.mxu0 %v1279_v0  ;;  %v1282_v2 = vld [vmem:[#allocation5 + $0x14] ss:$8 sps:$4 sm:$0xff]   ;;  %v1284_v3 = vld [vmem:[#allocation5 + $0x10] ss:$8 sps:$4 sm:$0xff]   ;;  %v1285_v4 = vld [vmem:[#allocation5 + $0x24] ss:$8 sps:$4 sm:$0xff]  }
  0xa3   :  { %365 = vmatpush1.bf16.msra.mxu0 %v1281_v1  ;;  %v1287_v5 = vld [vmem:[#allocation5 + $0x20] ss:$8 sps:$4 sm:$0xff]   ;;  %v1288_v6 = vld [vmem:[#allocation5 + $0x34] ss:$8 sps:$4 sm:$0xff]   ;;  %v1290_v7 = vld [vmem:[#allocation5 + $0x30] ss:$8 sps:$4 sm:$0xff]  }
  0xa4   :  { %366 = vmatprep.subr.bf16.mxu0 %v1282_v2  ;;  %v1291_v8 = vld [vmem:[#allocation5 + $0x44] ss:$8 sps:$4 sm:$0xff]   ;;  %v1293_v9 = vld [vmem:[#allocation5 + $0x40] ss:$8 sps:$4 sm:$0xff]   ;;  %v1294_v10 = vld [vmem:[#allocation5 + $0x54] ss:$8 sps:$4 sm:$0xff]  }
  0xa5   :  { %v1296_v11 = vld [vmem:[#allocation5 + $0x50] ss:$8 sps:$4 sm:$0xff]   ;;  %v1297_v12 = vld [vmem:[#allocation5 + $0x64] ss:$8 sps:$4 sm:$0xff]   ;;  %v1299_v13 = vld [vmem:[#allocation5 + $0x60] ss:$8 sps:$4 sm:$0xff]  }
  0xa6   :  { %v1300_v14 = vld [vmem:[#allocation5 + $0x74] ss:$8 sps:$4 sm:$0xff]   ;;  %v1330_v16 = vld [vmem:[#allocation8 + $0x4] ss:$8 sps:$4 sm:$0xff]   ;;  %v1332_v17 = vld [vmem:[#allocation8] ss:$8 sps:$4 sm:$0xff]  }
  0xa7   :  { %367 = vmatpush1.bf16.msra.mxu0 %v1284_v3  ;;  %v1329_v15 = vld [vmem:[#allocation2 + $0x4] ss:$8 sps:$4 sm:$0xff]   ;;  %617 = vmatprep.subr.bf16.mxu1 %v1330_v16  ;;  %v1302_v20 = vld [vmem:[#allocation5 + $0x70] ss:$8 sps:$4 sm:$0xff]   ;;  %v1303_v22 = vld [vmem:[#allocation5 + $0x84] ss:$8 sps:$4 sm:$0xff]  }
  0xa8   :  { %368 = vmatprep.subr.bf16.mxu0 %v1285_v4  ;;  %396 = vmatprep.mubr.bf16.mxu0 %v1329_v15  ;;  %v1333_v18 = vld [vmem:[#allocation8 + $0x14] ss:$8 sps:$4 sm:$0xff]   ;;  %v1335_v19 = vld [vmem:[#allocation8 + $0x10] ss:$8 sps:$4 sm:$0xff]   ;;  %v1336_v21 = vld [vmem:[#allocation8 + $0x24] ss:$8 sps:$4 sm:$0xff]  }
  0xa9   :  { %618 = vmatpush1.bf16.msra.mxu1 %v1332_v17  ;;  %v1338_v23 = vld [vmem:[#allocation8 + $0x20] ss:$8 sps:$4 sm:$0xff]   ;;  %v1339_v25 = vld [vmem:[#allocation8 + $0x34] ss:$8 sps:$4 sm:$0xff]   ;;  %v1341_v27 = vld [vmem:[#allocation8 + $0x30] ss:$8 sps:$4 sm:$0xff]  }
  0xaa   :  { %619 = vmatprep.subr.bf16.mxu1 %v1333_v18  ;;  %v1305_v24 = vld [vmem:[#allocation5 + $0x80] ss:$8 sps:$4 sm:$0xff]   ;;  %v1306_v26 = vld [vmem:[#allocation5 + $0x94] ss:$8 sps:$4 sm:$0xff]   ;;  %v1308_v28 = vld [vmem:[#allocation5 + $0x90] ss:$8 sps:$4 sm:$0xff]  }
  0xab   :  { %369 = vmatpush1.bf16.msra.mxu0 %v1287_v5  ;;  %v1342_v29 = vld [vmem:[#allocation8 + $0x44] ss:$8 sps:$4 sm:$0xff]   ;;  %v1344_v32 = vld [vmem:[#allocation8 + $0x40] ss:$8 sps:$4 sm:$0xff]   ;;  %v1312_v33 = vld [vmem:[#allocation5 + $0xb4] ss:$8 sps:$4 sm:$0xff]  }
  0xac   :  { %370 = vmatprep.subr.bf16.mxu0 %v1288_v6  ;;  %v1309_v30 = vld [vmem:[#allocation5 + $0xa4] ss:$8 sps:$4 sm:$0xff]   ;;  %v1311_v31 = vld [vmem:[#allocation5 + $0xa0] ss:$8 sps:$4 sm:$0xff]   ;;  %v1347_v35 = vld [vmem:[#allocation8 + $0x50] ss:$8 sps:$4 sm:$0xff]  }
  0xad   :  { %620 = vmatpush1.bf16.msra.mxu1 %v1335_v19  ;;  %v1345_v34 = vld [vmem:[#allocation8 + $0x54] ss:$8 sps:$4 sm:$0xff]   ;;  %v1348_v37 = vld [vmem:[#allocation8 + $0x64] ss:$8 sps:$4 sm:$0xff]   ;;  %v1350_v39 = vld [vmem:[#allocation8 + $0x60] ss:$8 sps:$4 sm:$0xff]  }
  0xae   :  { %621 = vmatprep.subr.bf16.mxu1 %v1336_v21  ;;  %v1314_v36 = vld [vmem:[#allocation5 + $0xb0] ss:$8 sps:$4 sm:$0xff]   ;;  %v1315_v38 = vld [vmem:[#allocation5 + $0xc4] ss:$8 sps:$4 sm:$0xff]   ;;  %v1317_v40 = vld [vmem:[#allocation5 + $0xc0] ss:$8 sps:$4 sm:$0xff]  }
  0xaf   :  { %371 = vmatpush1.bf16.msra.mxu0 %v1290_v7  ;;  %v1351_v41 = vld [vmem:[#allocation8 + $0x74] ss:$8 sps:$4 sm:$0xff]   ;;  %v1353_v43 = vld [vmem:[#allocation8 + $0x70] ss:$8 sps:$4 sm:$0xff]   ;;  %v1354_v45 = vld [vmem:[#allocation8 + $0x84] ss:$8 sps:$4 sm:$0xff]  }
  0xb0   :  { %372 = vmatprep.subr.bf16.mxu0 %v1291_v8  ;;  %v1318_v42 = vld [vmem:[#allocation5 + $0xd4] ss:$8 sps:$4 sm:$0xff]   ;;  %v1320_v44 = vld [vmem:[#allocation5 + $0xd0] ss:$8 sps:$4 sm:$0xff]   ;;  %v1321_v46 = vld [vmem:[#allocation5 + $0xe4] ss:$8 sps:$4 sm:$0xff]  }
  0xb1   :  { %622 = vmatpush1.bf16.msra.mxu1 %v1338_v23  ;;  %v1356_v47 = vld [vmem:[#allocation8 + $0x80] ss:$8 sps:$4 sm:$0xff]   ;;  %v1357_v49 = vld [vmem:[#allocation8 + $0x94] ss:$8 sps:$4 sm:$0xff]   ;;  %v1359_v51 = vld [vmem:[#allocation8 + $0x90] ss:$8 sps:$4 sm:$0xff]  }
  0xb2   :  { %623 = vmatprep.subr.bf16.mxu1 %v1339_v25  ;;  %v1323_v48 = vld [vmem:[#allocation5 + $0xe0] ss:$8 sps:$4 sm:$0xff]   ;;  %v1324_v50 = vld [vmem:[#allocation5 + $0xf4] ss:$8 sps:$4 sm:$0xff]   ;;  %v1326_v52 = vld [vmem:[#allocation5 + $0xf0] ss:$8 sps:$4 sm:$0xff]  }
  0xb3   :  { %373 = vmatpush1.bf16.msra.mxu0 %v1293_v9  ;;  %v1360_v53 = vld [vmem:[#allocation8 + $0xa4] ss:$8 sps:$4 sm:$0xff]   ;;  %v1362_v55 = vld [vmem:[#allocation8 + $0xa0] ss:$8 sps:$4 sm:$0xff]   ;;  %v1363_v56 = vld [vmem:[#allocation8 + $0xb4] ss:$8 sps:$4 sm:$0xff]  }
  0xb4   :  { %374 = vmatprep.subr.bf16.mxu0 %v1294_v10  ;;  %v1327_v54 = vld [vmem:[#allocation2] ss:$8 sps:$4 sm:$0xff]   ;;  %v1368_v59 = vld [vmem:[#allocation8 + $0xc0] ss:$8 sps:$4 sm:$0xff]   ;;  %v1381_v5 = vld [vmem:[#allocation11 + $0x10] ss:$8 sps:$4 sm:$0xff]  }
  0xb5   :  { %624 = vmatpush1.bf16.msra.mxu1 %v1341_v27  ;;  %v1365_v57 = vld [vmem:[#allocation8 + $0xb0] ss:$8 sps:$4 sm:$0xff]   ;;  %v1366_v58 = vld [vmem:[#allocation8 + $0xc4] ss:$8 sps:$4 sm:$0xff]   ;;  %v1369_v60 = vld [vmem:[#allocation8 + $0xd4] ss:$8 sps:$4 sm:$0xff]  }
  0xb6   :  { %625 = vmatprep.subr.bf16.mxu1 %v1342_v29  ;;  %v1371_v61 = vld [vmem:[#allocation8 + $0xd0] ss:$8 sps:$4 sm:$0xff]   ;;  %v1372_v62 = vld [vmem:[#allocation8 + $0xe4] ss:$8 sps:$4 sm:$0xff]   ;;  %v1374_v63 = vld [vmem:[#allocation8 + $0xe0] ss:$8 sps:$4 sm:$0xff]  }
  0xb7   :  { %375 = vmatpush1.bf16.msra.mxu0 %v1296_v11  ;;  %v1375_v0 = vld [vmem:[#allocation8 + $0xf4] ss:$8 sps:$4 sm:$0xff]   ;;  %v1377_v1 = vld [vmem:[#allocation8 + $0xf0] ss:$8 sps:$4 sm:$0xff]   ;;  %v1378_v2 = vld [vmem:[#allocation11] ss:$8 sps:$4 sm:$0xff]  }
  0xb8   :  { %376 = vmatprep.subr.bf16.mxu0 %v1297_v12  ;;  %v1380_v3 = vld [vmem:[#allocation11 + $0x4] ss:$8 sps:$4 sm:$0xff]   ;;  %v1383_v4 = vld [vmem:[#allocation11 + $0x14] ss:$8 sps:$4 sm:$0xff]   ;;  %v1384_v7 = vld [vmem:[#allocation11 + $0x20] ss:$8 sps:$4 sm:$0xff]  }
  0xb9   :  { %626 = vmatpush1.bf16.msra.mxu1 %v1344_v32  ;;  %v1386_v6 = vld [vmem:[#allocation11 + $0x24] ss:$8 sps:$4 sm:$0xff]   ;;  %v1389_v8 = vld [vmem:[#allocation11 + $0x34] ss:$8 sps:$4 sm:$0xff]   ;;  %v1387_v9 = vld [vmem:[#allocation11 + $0x30] ss:$8 sps:$4 sm:$0xff]  }
  0xba   :  { %627 = vmatprep.subr.bf16.mxu1 %v1345_v34  ;;  %v1392_v10 = vld [vmem:[#allocation11 + $0x44] ss:$8 sps:$4 sm:$0xff]   ;;  %v1390_v11 = vld [vmem:[#allocation11 + $0x40] ss:$8 sps:$4 sm:$0xff]   ;;  %v1395_v12 = vld [vmem:[#allocation11 + $0x54] ss:$8 sps:$4 sm:$0xff]  }
  0xbb   :  { %377 = vmatpush1.bf16.msra.mxu0 %v1299_v13  ;;  %v1393_v13 = vld [vmem:[#allocation11 + $0x50] ss:$8 sps:$4 sm:$0xff]   ;;  %v1396_v15 = vld [vmem:[#allocation11 + $0x60] ss:$8 sps:$4 sm:$0xff]   ;;  %v1401_v16 = vld [vmem:[#allocation11 + $0x74] ss:$8 sps:$4 sm:$0xff]  }
  0xbc   :  { %378 = vmatprep.subr.bf16.mxu0 %v1300_v14  ;;  %v1398_v14 = vld [vmem:[#allocation11 + $0x64] ss:$8 sps:$4 sm:$0xff]   ;;  %v1399_v17 = vld [vmem:[#allocation11 + $0x70] ss:$8 sps:$4 sm:$0xff]   ;;  %v1402_v19 = vld [vmem:[#allocation11 + $0x80] ss:$8 sps:$4 sm:$0xff]  }
  0xbd   :  { %628 = vmatpush1.bf16.msra.mxu1 %v1347_v35  ;;  %v1404_v18 = vld [vmem:[#allocation11 + $0x84] ss:$8 sps:$4 sm:$0xff]   ;;  %v1405_v21 = vld [vmem:[#allocation11 + $0x90] ss:$8 sps:$4 sm:$0xff]   ;;  %v1408_v23 = vld [vmem:[#allocation11 + $0xa0] ss:$8 sps:$4 sm:$0xff]  }
  0xbe   :  { %629 = vmatprep.subr.bf16.mxu1 %v1348_v37  ;;  %v1411_v25 = vld [vmem:[#allocation11 + $0xb0] ss:$8 sps:$4 sm:$0xff]   ;;  %v1414_v27 = vld [vmem:[#allocation11 + $0xc0] ss:$8 sps:$4 sm:$0xff]   ;;  %s1687_s8 = smov [#allocation17]  }
  0xbf   :  { %379 = vmatpush1.bf16.msra.mxu0 %v1302_v20  ;;  %v1407_v20 = vld [vmem:[#allocation11 + $0x94] ss:$8 sps:$4 sm:$0xff]   ;;  %s1112_s7 = sshll.u32 %s1687_s8, 4  ;;  %s1113_s7 = int_to_ptr.vmem [resolvable:$true] %s1112_s7 }
  0xc0   :  { %380 = vmatprep.subr.bf16.mxu0 %v1303_v22  ;;  %v1410_v22 = vld [vmem:[#allocation11 + $0xa4] ss:$8 sps:$4 sm:$0xff]   ;;  %s1640_s2 = scalar_lea.vmem %s1113_s7, 256  ;;  %p1645_p3 = scmp.lt.s32.totalorder %s1113_s7, %s1113_s7 }
  0xc1   :  { %630 = vmatpush1.bf16.msra.mxu1 %v1350_v39  ;;  %p1641_p2 = scmp.ne.s32.totalorder %s1113_s7, %s1640_s2  ;;  %p1646_p4 = scmp.lt.s32.totalorder %s1640_s2, %s1640_s2 }
  0xc2   :  { %631 = vmatprep.subr.bf16.mxu1 %v1351_v41 }
  0xc3   :  { %381 = vmatpush1.bf16.msra.mxu0 %v1305_v24  ;;  %v1413_v24 = vld [vmem:[#allocation11 + $0xb4] ss:$8 sps:$4 sm:$0xff]   ;;  %p1647_p5 = por %p1646_p4, %p1645_p3 }
  0xc4   :  { %382 = vmatprep.subr.bf16.mxu0 %v1306_v26  ;;  %v1416_v26 = vld [vmem:[#allocation11 + $0xc4] ss:$8 sps:$4 sm:$0xff]  }
  0xc5   :  { %632 = vmatpush1.bf16.msra.mxu1 %v1353_v43  ;;  %p1648_p6 = pnand %p1647_p5, %p1641_p2 }
  0xc6   :  { %633 = vmatprep.subr.bf16.mxu1 %v1354_v45 }
  0xc7   :  { %383 = vmatpush1.bf16.msra.mxu0 %v1308_v28  ;;  %v184_v28 = vlaneseq }
  0xc8   :  { %384 = vmatprep.subr.bf16.mxu0 %v1309_v30 }
  0xc9   :  { %634 = vmatpush1.bf16.msra.mxu1 %v1356_v47  ;;  %v185_v29 = vshrl.u32 %v184_v28, 7  ;;  %v702_v28 = vld [vmem:[#allocation13] sm:$0x3] }
  0xca   :  { %635 = vmatprep.subr.bf16.mxu1 %v1357_v49  ;;  %v1419_v49 = vld [vmem:[#allocation11 + $0xd4] ss:$8 sps:$4 sm:$0xff]  }
  0xcb   :  { %385 = vmatpush1.bf16.msra.mxu0 %v1311_v31  ;;  %v1872_v30 = vsub.s32 1, %v185_v29  ;;  %v182_v31 = vld [vmem:[#allocation7] sm:$0x3]  ;;  %v1874_v32 = vsub.s32 0, %v185_v29 }
  0xcc   :  { %386 = vmatprep.subr.bf16.mxu0 %v1312_v33 }
  0xcd   :  { %636 = vmatpush1.bf16.msra.mxu1 %v1359_v51  ;;  %v191_v33 = vrot.slane %v182_v31, %v1872_v30  ;;  %v187_v34 = vrot.slane %v182_v31, %v1874_v32  ;;  %v1422_v51 = vld [vmem:[#allocation11 + $0xe4] ss:$8 sps:$4 sm:$0xff]   ;;  %v707_v29 = vrot.slane %v702_v28, %v1874_v32  ;;  %v711_v31 = vrot.slane %v702_v28, %v1872_v30 }
  0xce   :  { %637 = vmatprep.subr.bf16.mxu1 %v1360_v53  ;;  %v1425_v53 = vld [vmem:[#allocation11 + $0xf4] ss:$8 sps:$4 sm:$0xff]  }
  0xcf   :  { %387 = vmatpush1.bf16.msra.mxu0 %v1314_v36 }
  0xd0   :  { %388 = vmatprep.subr.bf16.mxu0 %v1315_v38 }
  0xd1   :  { %638 = vmatpush1.bf16.msra.mxu1 %v1362_v55  ;;  %v1426_v55 = vld [vmem:[#allocation14 + $0x40] sm:$0xff]  }
  0xd2   :  { %639 = vmatprep.subr.bf16.mxu1 %v1363_v56  ;;  %v1427_v56 = vld [vmem:[#allocation14] sm:$0xff]  }
  0xd3   :  { %389 = vmatpush1.bf16.msra.mxu0 %v1317_v40 }
  0xd4   :  { %390 = vmatprep.subr.bf16.mxu0 %v1318_v42 }
  0xd5   :  { %640 = vmatpush1.bf16.msra.mxu1 %v1365_v57  ;;  %v1428_v57 = vld [vmem:[#allocation14 + $0x48] sm:$0xff]  }
  0xd6   :  { %641 = vmatprep.subr.bf16.mxu1 %v1366_v58  ;;  %v1429_v58 = vld [vmem:[#allocation14 + $0x8] sm:$0xff]  }
  0xd7   :  { %391 = vmatpush1.bf16.msra.mxu0 %v1320_v44 }
  0xd8   :  { %392 = vmatprep.subr.bf16.mxu0 %v1321_v46 }
  0xd9   :  { %642 = vmatpush1.bf16.msra.mxu1 %v1368_v59  ;;  %v1430_v59 = vld [vmem:[#allocation14 + $0x50] sm:$0xff]  }
  0xda   :  { %643 = vmatprep.subr.bf16.mxu1 %v1369_v60  ;;  %v1431_v60 = vld [vmem:[#allocation14 + $0x10] sm:$0xff]  }
  0xdb   :  { %393 = vmatpush1.bf16.msra.mxu0 %v1323_v48 }
  0xdc   :  { %394 = vmatprep.subr.bf16.mxu0 %v1324_v50  ;;  %v1417_v50 = vld [vmem:[#allocation11 + $0xd0] ss:$8 sps:$4 sm:$0xff]  }
  0xdd   :  { %644 = vmatpush1.bf16.msra.mxu1 %v1371_v61  ;;  %v1432_v61 = vld [vmem:[#allocation14 + $0x58] sm:$0xff]  }
  0xde   :  { %645 = vmatprep.subr.bf16.mxu1 %v1372_v62  ;;  %v1433_v62 = vld [vmem:[#allocation14 + $0x18] sm:$0xff]  }
  0xdf   :  { %395 = vmatpush1.bf16.msra.mxu0 %v1326_v52  ;;  %v1420_v52 = vld [vmem:[#allocation11 + $0xe0] ss:$8 sps:$4 sm:$0xff]  }
  0xe0   :  { %874 = vmatprep.subr.bf16.mxu0 %v1380_v3 }
  0xe1   :  { %646 = vmatpush1.bf16.msra.mxu1 %v1374_v63  ;;  %v1434_v63 = vld [vmem:[#allocation14 + $0x60] sm:$0xff]  }
  0xe2   :  { %397 = vmatmul.mubr.bf16.vlgmr.msra.gmra.mrb[0].mxu0 %v1327_v54  ;;  %647 = vmatprep.subr.bf16.mxu1 %v1375_v0  ;;  %v1423_v54 = vld [vmem:[#allocation11 + $0xf0] ss:$8 sps:$4 sm:$0xff]   ;;  %v1435_v0 = vld [vmem:[#allocation14 + $0x20] sm:$0xff]  }
  0xe3   :  { %875 = vmatpush1.bf16.msra.mxu0 %v1378_v2 }
  0xe4   :  { %876 = vmatprep.subr.bf16.mxu0 %v1383_v4 }
  0xe5   :  { %648 = vmatpush1.bf16.msra.mxu1 %v1377_v1  ;;  %v445_v1 = vld [vmem:[#allocation10] sm:$0x3] }
  0xe6   :  { %1243 = vmatprep.subr.bf16.mxu1 %v1426_v55  ;;  %v450_v2 = vrot.slane %v445_v1, %v1874_v32  ;;  %v454_v3 = vrot.slane %v445_v1, %v1872_v30 }
  0xe7   :  { %877 = vmatpush1.bf16.msra.mxu0 %v1381_v5 }
  0xe8   :  { %878 = vmatprep.subr.bf16.mxu0 %v1386_v6 }
  0xeb   :  { %879 = vmatpush1.bf16.msra.mxu0 %v1384_v7 }
  0xec   :  { %880 = vmatprep.subr.bf16.mxu0 %v1389_v8 }
  0xef   :  { %881 = vmatpush1.bf16.msra.mxu0 %v1387_v9 }
  0xf0   :  { %882 = vmatprep.subr.bf16.mxu0 %v1392_v10 }
  0xf3   :  { %883 = vmatpush1.bf16.msra.mxu0 %v1390_v11 }
  0xf4   :  { %884 = vmatprep.subr.bf16.mxu0 %v1395_v12 }
  0xf7   :  { %885 = vmatpush1.bf16.msra.mxu0 %v1393_v13 }
  0xf8   :  { %886 = vmatprep.subr.bf16.mxu0 %v1398_v14 }
  0xfb   :  { %887 = vmatpush1.bf16.msra.mxu0 %v1396_v15 }
  0xfc   :  { %888 = vmatprep.subr.bf16.mxu0 %v1401_v16 }
  0xff   :  { %889 = vmatpush1.bf16.msra.mxu0 %v1399_v17 }
 0x100   :  { %890 = vmatprep.subr.bf16.mxu0 %v1404_v18 }
 0x103   :  { %891 = vmatpush1.bf16.msra.mxu0 %v1402_v19 }
 0x104   :  { %892 = vmatprep.subr.bf16.mxu0 %v1407_v20 }
 0x107   :  { %893 = vmatpush1.bf16.msra.mxu0 %v1405_v21 }
 0x108   :  { %894 = vmatprep.subr.bf16.mxu0 %v1410_v22  ;;  %v1436_v22 = vld [vmem:[#allocation14 + $0x68] sm:$0xff]  }
 0x10b   :  { %895 = vmatpush1.bf16.msra.mxu0 %v1408_v23  ;;  %v1437_v23 = vld [vmem:[#allocation14 + $0x28] sm:$0xff]  }
 0x10c   :  { %896 = vmatprep.subr.bf16.mxu0 %v1413_v24  ;;  %v1438_v24 = vld [vmem:[#allocation14 + $0x70] sm:$0xff]  }
 0x10f   :  { %897 = vmatpush1.bf16.msra.mxu0 %v1411_v25  ;;  %v1439_v25 = vld [vmem:[#allocation14 + $0x30] sm:$0xff]  }
 0x110   :  { %898 = vmatprep.subr.bf16.mxu0 %v1416_v26  ;;  %v1440_v26 = vld [vmem:[#allocation14 + $0x78] sm:$0xff]  }
 0x113   :  { %899 = vmatpush1.bf16.msra.mxu0 %v1414_v27  ;;  %v1441_v27 = vld [vmem:[#allocation14 + $0x38] sm:$0xff]  }
 0x114   :  { %900 = vmatprep.subr.bf16.mxu0 %v1419_v49 }
 0x117   :  { %901 = vmatpush1.bf16.msra.mxu0 %v1417_v50  ;;  %v1226_v50 = vld [vmem:[#allocation16] ss:$0 sm:$0xff] }
 0x118   :  { %902 = vmatprep.subr.bf16.mxu0 %v1422_v51 }
 0x11b   :  { %903 = vmatpush1.bf16.msra.mxu0 %v1420_v52 }
 0x11c   :  { %904 = vmatprep.subr.bf16.mxu0 %v1425_v53 }
 0x11f   :  { %905 = vmatpush1.bf16.msra.mxu0 %v1423_v54 }
 0x1b5   :  { %v398_v35 = vpop.f32.mrb[0].mxu0 }
 0x1b6   :  { %v400_v36 = vpop.f32.mrb[1].mxu0  ;;  %v1880_v39 = vadd.f32 %v398_v35, %v187_v34 }
 0x1b7   :  { %v1878_v37 = vadd.f32 %v400_v36, %v191_v33  ;;  %v402_v38 = vpop.f32.mrb[2].mxu0 }
 0x1b8   :  { %v403_v40 = vadd.f32 %v402_v38, %v187_v34  ;;  %v404_v41 = vpop.f32.mrb[3].mxu0  ;;  %v407_v46 = vmax.f32 %v1880_v39, 0.0 }
 0x1b9   :  { %v405_v42 = vadd.f32 %v404_v41, %v191_v33  ;;  %v408_v44 = vmax.f32 %v1878_v37, 0.0 }
 0x1ba   :  { %v409_v43 = vmax.f32 %v403_v40, 0.0 }
 0x1bb   :  { %v410_v45 = vmax.f32 %v405_v42, 0.0 }
 0x1bc   :  { %v411_v48 = vpack.c.bf16 %v409_v43, %v407_v46 }
 0x1bd   :  { %v412_v47 = vpack.c.bf16 %v410_v45, %v408_v44 }
 0x1bf   :  { %649 = vmatprep.mubr.bf16.mxu1 %v412_v47 }
 0x1c0   :  { %650 = vmatmul.mubr.bf16.vlgmr.msra.gmra.mrb[0].mxu1 %v411_v48 }
 0x1c1   :  { %1244 = vmatpush3.bf16.msra.mxu1 %v1427_v56 }
 0x1c2   :  { %1245 = vmatprep.subr.bf16.mxu1 %v1428_v57 }
 0x1c5   :  { %1246 = vmatpush3.bf16.msra.mxu1 %v1429_v58 }
 0x1c6   :  { %1247 = vmatprep.subr.bf16.mxu1 %v1430_v59 }
 0x1c9   :  { %1248 = vmatpush3.bf16.msra.mxu1 %v1431_v60 }
 0x1ca   :  { %1249 = vmatprep.subr.bf16.mxu1 %v1432_v61 }
 0x1cd   :  { %1250 = vmatpush3.bf16.msra.mxu1 %v1433_v62 }
 0x1ce   :  { %1251 = vmatprep.subr.bf16.mxu1 %v1434_v63 }
 0x1d1   :  { %1252 = vmatpush3.bf16.msra.mxu1 %v1435_v0 }
 0x1d2   :  { %1253 = vmatprep.subr.bf16.mxu1 %v1436_v22 }
 0x1d5   :  { %1254 = vmatpush3.bf16.msra.mxu1 %v1437_v23 }
 0x1d6   :  { %1255 = vmatprep.subr.bf16.mxu1 %v1438_v24 }
 0x1d9   :  { %1256 = vmatpush3.bf16.msra.mxu1 %v1439_v25 }
 0x1da   :  { %1257 = vmatprep.subr.bf16.mxu1 %v1440_v26 }
 0x1dd   :  { %1258 = vmatpush3.bf16.msra.mxu1 %v1441_v27 }
 0x293   :  { %v651_v4 = vpop.f32.mrb[0].mxu1 }
 0x294   :  { %v652_v5 = vadd.f32 %v651_v4, %v450_v2  ;;  %v653_v6 = vpop.f32.mrb[1].mxu1 }
 0x295   :  { %v654_v7 = vadd.f32 %v653_v6, %v454_v3  ;;  %v655_v8 = vpop.f32.mrb[2].mxu1 }
 0x296   :  { %v656_v9 = vadd.f32 %v655_v8, %v450_v2  ;;  %v657_v10 = vpop.f32.mrb[3].mxu1  ;;  %v660_v13 = vmax.f32 %v652_v5, 0.0 }
 0x297   :  { %v661_v11 = vmax.f32 %v654_v7, 0.0  ;;  %v658_v12 = vadd.f32 %v657_v10, %v454_v3 }
 0x298   :  { %v662_v14 = vmax.f32 %v656_v9, 0.0  ;;  %v664_v19 = vadd.f32 %v660_v13, %v407_v46 }
 0x299   :  { %v663_v15 = vmax.f32 %v658_v12, 0.0  ;;  %v665_v17 = vadd.f32 %v661_v11, %v408_v44 }
 0x29a   :  { %v666_v16 = vadd.f32 %v662_v14, %v409_v43 }
 0x29b   :  { %v667_v18 = vadd.f32 %v663_v15, %v410_v45 }
 0x29c   :  { %v668_v21 = vpack.c.bf16 %v666_v16, %v664_v19 }
 0x29d   :  { %v669_v20 = vpack.c.bf16 %v667_v18, %v665_v17 }
 0x29f   :  { %906 = vmatprep.mubr.bf16.mxu0 %v669_v20 }
 0x2a0   :  { %907 = vmatmul.mubr.bf16.vlgmr.msra.gmra.mrb[4].mxu0 %v668_v21 }
 0x373   :  { %v908_v33 = vpop.f32.mrb[4].mxu0 }
 0x374   :  { %v909_v34 = vadd.f32 %v908_v33, %v707_v29  ;;  %v910_v35 = vpop.f32.mrb[5].mxu0 }
 0x375   :  { %v911_v36 = vadd.f32 %v910_v35, %v711_v31  ;;  %v912_v37 = vpop.f32.mrb[6].mxu0 }
 0x376   :  { %v917_v38 = vmax.f32 %v909_v34, 0.0  ;;  %v913_v39 = vadd.f32 %v912_v37, %v707_v29  ;;  %v914_v40 = vpop.f32.mrb[7].mxu0 }
 0x377   :  { %v918_v41 = vmax.f32 %v911_v36, 0.0  ;;  %v915_v42 = vadd.f32 %v914_v40, %v711_v31 }
 0x378   :  { %v919_v43 = vmax.f32 %v913_v39, 0.0  ;;  %v921_v45 = vadd.f32 %v917_v38, %v664_v19 }
 0x379   :  { %v920_v44 = vmax.f32 %v915_v42, 0.0  ;;  %v922_v47 = vadd.f32 %v918_v41, %v665_v17 }
 0x37a   :  { %v923_v46 = vadd.f32 %v919_v43, %v666_v16 }
 0x37b   :  { %v924_v48 = vadd.f32 %v920_v44, %v667_v18 }
 0x37c   :  { %v925_v49 = vpack.c.bf16 %v923_v46, %v921_v45 }
 0x37d   :  { %v926_v32 = vpack.c.bf16 %v924_v48, %v922_v47 }
 0x37f   :  { %1094 = vmatprep.mubr.bf16.mxu1 %v926_v32 }
 0x380   :  { %1095 = vmatmul.mubr.bf16.vlgmr.msra.gmra.mrb[4].mxu1 %v925_v49 }
 0x453   :  { %v1259_v30 = vpop.f32.mrb[4].mxu1 }
 0x454   :  { %v1260_v51 = vpop.f32.mrb[5].mxu1 }
 0x455   :  { %v1261_v52 = vadd.f32 %v1260_v51, %v1259_v30  ;;  %v1262_v53 = vpop.f32.mrb[6].mxu1 }
 0x456   :  { %v1263_v54 = vpop.f32.mrb[7].mxu1 }
 0x457   :  { %v1097_v55 = vadd.f32 %v1261_v52, %v1226_v50  ;;  %v1264_v56 = vadd.f32 %v1263_v54, %v1262_v53 }
 0x459   :  { %v1103_v57 = vmax.f32 %v1097_v55, 0.0  ;;  %v1100_v58 = vadd.f32 %v1264_v56, %v1226_v50 }
 0x45b   :  { %1105 = vst [vmem:[#allocation17] sm:$0xff] %v1103_v57  ;;  %v1104_v59 = vmax.f32 %v1100_v58, 0.0 }
 0x45d   :  { %1106 = vst [vmem:[#allocation17 + $0x8] sm:$0xff] %v1104_v59 }
 0x45e   :  { %1651 = shalt.err (!%p1648_p6)
}
 0x45f   :  { %s1652_s30 = scalar_lea.hbm %s1912_s9, 256 }
 0x460   :  { %p1653_p7 = scmp.ne.s32.totalorder %s1912_s9, %s1652_s30  ;;  %p1656_p8 = scmp.lt.u32.totalorder %s1652_s30, %s1912_s9 }
 0x462   :  { %p1658_p9 = pnand %p1656_p8, %p1653_p7 }
 0x464   :  { %1661 = shalt.err (!%p1658_p9)
}
 0x465   :  { %1118 = dma.vmem_to_hbm [thread:$0]  %s1113_s7, 256, %s1912_s9, [#allocation4], %s1676_s21, %s1676_s21, %s1677_s22  }
 0x466   :  { %1672 = dma.done.wait [#allocation4], 256  }
 0x467   :  { %1673 = vsyncadd [#allocation4], 4294967040 }
 0x468   :  { %1122 = vsyncpa [#allocation3], 1 }
 0x469   :  { %1123 = vsyncpa [#allocation6], 1 }
 0x46a   :  { %1124 = vsyncpa [#allocation9], 1 }
 0x46b   :  { %1125 = vsyncpa [#allocation12], 1 }
 0x46c   :  { %1126 = vsyncpa [#allocation15], 1 }
 0x46d   :  { %1127 = vsyncpa [#allocation4], 1 }

</bundles_post_ra>
